<compile_context>
chip_gen: v7x
topology: tpu7x:2x2x1
jax: 0.10.0
libtpu: 0.0.40
codegen_flags: <defaults>
</compile_context>

<pallas_src>
import functools

import jax
import jax.numpy as jnp
from jax.experimental import pallas as pl
from jax.experimental.pallas import tpu as pltpu

# ----------------------------- configuration --------------------------------
FEATURES_NUM = 4            # input channels
CONV_LAYERS = [8, 16]       # conv channel progression
FC_LAYERS = [32, 16]        # fc hidden sizes
LABEL_NUM = 3               # number of output classes
BATCH = 2
SEQ_LEN = 16                # L (1-D spatial length)
BN_EPS = 1e-5


# ------------------------------- kernel --------------------------------------
def fused_net_kernel(x_ref, w1_ref, s1_ref, w2_ref, s2_ref, pool_ref,
                     fw1_ref, fb1_ref, fw2_ref, fb2_ref, fw3_ref, fb3_ref,
                     o_ref, win_ref, *, seq_len):
    """Entire Net.forward in one kernel; all operands resident in VMEM.

      x_ref:    (C_in, N*L)      input; channels on sublanes, batch*length on lanes
      w?_ref:   (C_out, 3*C_in)  conv weights, BN scale folded in, tap-major columns
      s?_ref:   (C_out, 1)       folded BN shift: scale*(conv_bias - mean) + beta
      pool_ref: (N, N*L)         per-batch-segment averaging matrix (1/L or 0)
      fw1/fb1:  (C_last, F0), (1, F0)  fc1 (no activation, as in the reference)
      fw2/fb2:  (F0, F1), (1, F1)      fc  (Linear + ReLU + Dropout[eval -> identity])
      fw3/fb3:  (F1, K), (1, K)        cls
      o_ref:    (N, K)
      win_ref:  (3*C_max, N*L+2) VMEM scratch holding the stacked k=3 conv windows
    """
    L = seq_len
    NL = x_ref.shape[1]

    win_ref[...] = jnp.zeros_like(win_ref)        # in-kernel zero padding of the windows

    def conv_bn_relu(h, w_ref, s_ref):
        """(C, N*L) -> (C_out, N*L): Conv1d(k=3,pad=1)+BN+ReLU as ONE contraction."""
        C = h.shape[0]
        pos = jax.lax.broadcasted_iota(jnp.int32, h.shape, 1) % L
        # Center tap (k=1): h itself, staged at lane offset 1 of the window scratch.
        win_ref[C:2 * C, 1:NL + 1] = h
        # Left tap (k=0): h shifted right by one within each length-L segment; the
        # mask zeroes segment starts (conv padding, and no cross-batch leakage).
        left = jnp.where(pos == 0, 0.0, win_ref[C:2 * C, 0:NL])
        win_ref[0:C, 1:NL + 1] = left
        # Right tap (k=2): h shifted left by one within each segment.
        right = jnp.where(pos == L - 1, 0.0, win_ref[C:2 * C, 2:NL + 2])
        win_ref[2 * C:3 * C, 1:NL + 1] = right
        # Single MXU push over the fused (tap, channel) contraction dimension.
        y = jnp.dot(w_ref[...], win_ref[0:3 * C, 1:NL + 1],
                    preferred_element_type=jnp.float32)
        return jnp.maximum(y + s_ref[...], 0.0)    # folded-BN shift + ReLU

    h = conv_bn_relu(x_ref[...], w1_ref, s1_ref)                     # (C1, N*L)
    h = conv_bn_relu(h, w2_ref, s2_ref)                              # (C2, N*L)

    # AdaptiveAvgPool1d(1) + flatten, as one tiny matmul against the averaging matrix.
    pooled = jnp.einsum("ns,cs->nc", pool_ref[...], h,
                        preferred_element_type=jnp.float32)          # (N, C2)

    z = jnp.dot(pooled, fw1_ref[...], preferred_element_type=jnp.float32) + fb1_ref[...]
    z = jnp.dot(z, fw2_ref[...], preferred_element_type=jnp.float32) + fb2_ref[...]
    z = jnp.maximum(z, 0.0)                  # ReLU; Dropout is identity in eval mode
    out = jnp.dot(z, fw3_ref[...], preferred_element_type=jnp.float32) + fb3_ref[...]
    o_ref[...] = out.astype(o_ref.dtype)


# ------------------------------ wrapper ---------------------------------------
def _net_forward_impl(x, params):
    """x: (N, C_in, L) NCL layout -> logits (N, LABEL_NUM)."""
    N, C_in, L = x.shape
    NL = N * L
    # Lane-dense working layout: channels on sublanes, batch*length on lanes.
    x2d = jnp.transpose(x, (1, 0, 2)).reshape(C_in, NL)
    # Averaging matrix implementing AdaptiveAvgPool1d(1) per batch segment.
    seg = jnp.arange(NL, dtype=jnp.int32) // L
    pool = (seg[None, :] == jnp.arange(N, dtype=jnp.int32)[:, None]).astype(jnp.float32) / L

    (w1, s1), (w2, s2) = params["conv"]
    fw1, fb1 = params["fc1"]
    fw2, fb2 = params["fc"]
    fw3, fb3 = params["cls"]

    max_c_in = max([FEATURES_NUM] + CONV_LAYERS[:-1])   # widest conv *input* channels
    vmem = pl.BlockSpec(memory_space=pltpu.MemorySpace.VMEM)
    return pl.pallas_call(
        functools.partial(fused_net_kernel, seq_len=L),
        out_shape=jax.ShapeDtypeStruct((N, LABEL_NUM), jnp.float32),
        in_specs=[vmem] * 12,
        out_specs=vmem,
        scratch_shapes=[pltpu.VMEM((3 * max_c_in, NL + 2), jnp.float32)],
    )(x2d, w1, s1, w2, s2, pool, fw1, fb1, fw2, fb2, fw3, fb3)


net_forward = jax.jit(_net_forward_impl)


# --------------------------- parameter setup ----------------------------------
def init_params(key):
    """Returns (kernel-format params, raw params for the pure-JAX reference)."""
    raw = {"conv": []}
    kern = {"conv": []}
    in_c = FEATURES_NUM
    for out_c in CONV_LAYERS:
        key, k_w, k_b, k_g, k_be, k_m, k_v = jax.random.split(key, 7)
        w = jax.random.normal(k_w, (out_c, in_c, 3), jnp.float32) * 0.1   # Conv1d weight
        b = jax.random.normal(k_b, (out_c,), jnp.float32) * 0.1           # Conv1d bias
        gamma = 1.0 + 0.1 * jax.random.normal(k_g, (out_c,), jnp.float32)
        beta = 0.1 * jax.random.normal(k_be, (out_c,), jnp.float32)
        mean = 0.1 * jax.random.normal(k_m, (out_c,), jnp.float32)
        var = 1.0 + 0.1 * jax.random.uniform(k_v, (out_c,), jnp.float32)
        raw["conv"].append(dict(w=w, b=b, gamma=gamma, beta=beta, mean=mean, var=var))

        # Fold BatchNorm (eval) into the conv: scale goes straight into the weights,
        # everything else into a per-channel shift.
        scale = gamma / jnp.sqrt(var + BN_EPS)                            # (C_out,)
        shift = scale * (b - mean) + beta                                 # (C_out,)
        w_folded = w * scale[:, None, None]                               # (C_out, C_in, 3)
        # Fused im2col-style weight: column index = k * C_in + c_in.
        w_fused = jnp.transpose(w_folded, (0, 2, 1)).reshape(out_c, 3 * in_c)
        kern["conv"].append((w_fused, shift[:, None]))
        in_c = out_c

    def linear(k, fan_in, fan_out):
        k_w, k_b = jax.random.split(k)
        w = jax.random.normal(k_w, (fan_in, fan_out), jnp.float32) * 0.1  # stored (in, out)
        b = jax.random.normal(k_b, (1, fan_out), jnp.float32) * 0.1
        return w, b

    key, k1, k2, k3 = jax.random.split(key, 4)
    kern["fc1"] = raw["fc1"] = linear(k1, CONV_LAYERS[-1], FC_LAYERS[0])
    kern["fc"] = raw["fc"] = linear(k2, FC_LAYERS[0], FC_LAYERS[1])
    kern["cls"] = raw["cls"] = linear(k3, FC_LAYERS[1], LABEL_NUM)
    return kern, raw


# --------------------------- pure-JAX reference --------------------------------
def reference_forward(x, raw):
    """Eval-mode reference with direct Conv1d/BN math (no folding, no im2col)."""
    h = x                                                    # (N, C, L)
    for layer in raw["conv"]:
        w, b = layer["w"], layer["b"]
        L = h.shape[-1]
        xp = jnp.pad(h, ((0, 0), (0, 0), (1, 1)))
        win = jnp.stack([xp[:, :, k:k + L] for k in range(3)], axis=-1)   # (N,C,L,3)
        conv = jnp.einsum("nclk,ock->nol", win, w) + b[None, :, None]
        bn = ((conv - layer["mean"][None, :, None])
              / jnp.sqrt(layer["var"] + BN_EPS)[None, :, None]
              * layer["gamma"][None, :, None] + layer["beta"][None, :, None])
        h = jnp.maximum(bn, 0.0)
    pooled = jnp.mean(h, axis=-1)                            # AdaptiveAvgPool1d(1) + view
    fw1, fb1 = raw["fc1"]
    fw2, fb2 = raw["fc"]
    fw3, fb3 = raw["cls"]
    z = pooled @ fw1 + fb1                                   # fc1 (no activation)
    z = jnp.maximum(z @ fw2 + fb2, 0.0)                      # fc: Linear+ReLU+Dropout(id)
    return z @ fw3 + fb3                                     # cls


# ---------------------------------- main ---------------------------------------
if __name__ == "__main__":
    key = jax.random.PRNGKey(0)
    key, k_x, k_p = jax.random.split(key, 3)
    x = jax.random.normal(k_x, (BATCH, FEATURES_NUM, SEQ_LEN), jnp.float32)  # NCL
    params, raw_params = init_params(k_p)

    out = jax.block_until_ready(net_forward(x, params))
    assert out.shape == (BATCH, LABEL_NUM), out.shape

    ref = reference_forward(x, raw_params)
    assert jnp.allclose(out, ref, atol=1e-4, rtol=1e-4), \
        f"max|diff|={float(jnp.max(jnp.abs(out - ref)))}"
    print("KERNEL_OK")
</pallas_src>

<mosaic_0001>
module attributes {stable_mosaic.version = 11 : i64} {
  func.func @fused_net_kernel(%arg0: memref<4x32xf32, #tpu.memory_space<vmem>>, %arg1: memref<8x12xf32, #tpu.memory_space<vmem>>, %arg2: memref<8x1xf32, #tpu.memory_space<vmem>>, %arg3: memref<16x24xf32, #tpu.memory_space<vmem>>, %arg4: memref<16x1xf32, #tpu.memory_space<vmem>>, %arg5: memref<2x32xf32, #tpu.memory_space<vmem>>, %arg6: memref<16x32xf32, #tpu.memory_space<vmem>>, %arg7: memref<1x32xf32, #tpu.memory_space<vmem>>, %arg8: memref<32x16xf32, #tpu.memory_space<vmem>>, %arg9: memref<1x16xf32, #tpu.memory_space<vmem>>, %arg10: memref<16x3xf32, #tpu.memory_space<vmem>>, %arg11: memref<1x3xf32, #tpu.memory_space<vmem>>, %arg12: memref<2x3xf32, #tpu.memory_space<vmem>>, %arg13: memref<24x34xf32, #tpu.memory_space<vmem>>) attributes {dimension_semantics = [], scalar_prefetch = 0 : i64, scratch_operands = 1 : i64, tpu.core_type = #tpu.core_type<tc>} {
    %cst = arith.constant 0.000000e+00 : f32
    %0 = vector.broadcast %cst : f32 to vector<24x34xf32>
    %c0 = arith.constant 0 : index
    %c0_0 = arith.constant 0 : index
    %1 = vector.load %arg13[%c0, %c0_0] : memref<24x34xf32, #tpu.memory_space<vmem>>, vector<24x34xf32>
    tpu.vector_store %arg13[%c0, %c0_0], %0 {strides = array<i32>} : memref<24x34xf32, #tpu.memory_space<vmem>>, vector<24x34xf32>,
    %c0_1 = arith.constant 0 : index
    %c0_2 = arith.constant 0 : index
    %2 = vector.load %arg0[%c0_1, %c0_2] : memref<4x32xf32, #tpu.memory_space<vmem>>, vector<4x32xf32>
    %3 = tpu.iota {dimensions = array<i32: 1>} : vector<4x32xi32>
    %c16_i32 = arith.constant 16 : i32
    %c0_i32 = arith.constant 0 : i32
    %4 = arith.cmpi eq, %c16_i32, %c0_i32 : i32
    %c1_i32 = arith.constant 1 : i32
    %5 = arith.select %4, %c1_i32, %c16_i32 : i32
    %6 = vector.broadcast %5 : i32 to vector<4x32xi32>
    %7 = arith.remsi %3, %6 : vector<4x32xi32>
    %c0_i32_3 = arith.constant 0 : i32
    %8 = vector.broadcast %c0_i32_3 : i32 to vector<4x32xi32>
    %9 = arith.cmpi ne, %7, %8 : vector<4x32xi32>
    %c0_i32_4 = arith.constant 0 : i32
    %10 = vector.broadcast %c0_i32_4 : i32 to vector<4x32xi32>
    %11 = arith.cmpi slt, %7, %10 : vector<4x32xi32>
    %c0_i32_5 = arith.constant 0 : i32
    %12 = arith.cmpi slt, %5, %c0_i32_5 : i32
    %13 = vector.broadcast %12 : i1 to vector<4x32xi1>
    %14 = vector.broadcast %13 : vector<4x32xi1> to vector<4x32xi1>
    %15 = arith.xori %11, %14 : vector<4x32xi1>
    %16 = arith.andi %15, %9 : vector<4x32xi1>
    %17 = vector.broadcast %5 : i32 to vector<4x32xi32>
    %18 = arith.addi %7, %17 : vector<4x32xi32>
    %19 = arith.select %16, %18, %7 : vector<4x32xi1>, vector<4x32xi32>
    %c4 = arith.constant 4 : index
    %c1 = arith.constant 1 : index
    %20 = vector.load %arg13[%c4, %c1] : memref<24x34xf32, #tpu.memory_space<vmem>>, vector<4x32xf32>
    tpu.vector_store %arg13[%c4, %c1], %2 {strides = array<i32>} : memref<24x34xf32, #tpu.memory_space<vmem>>, vector<4x32xf32>,
    %c0_i32_6 = arith.constant 0 : i32
    %21 = vector.broadcast %c0_i32_6 : i32 to vector<4x32xi32>
    %22 = arith.cmpi eq, %19, %21 : vector<4x32xi32>
    %c4_7 = arith.constant 4 : index
    %c0_8 = arith.constant 0 : index
    %23 = vector.load %arg13[%c4_7, %c0_8] : memref<24x34xf32, #tpu.memory_space<vmem>>, vector<4x32xf32>
    %cst_9 = arith.constant 0.000000e+00 : f32
    %24 = vector.broadcast %cst_9 : f32 to vector<4x32xf32>
    %25 = arith.select %22, %24, %23 : vector<4x32xi1>, vector<4x32xf32>
    %c0_10 = arith.constant 0 : index
    %c1_11 = arith.constant 1 : index
    %26 = vector.load %arg13[%c0_10, %c1_11] : memref<24x34xf32, #tpu.memory_space<vmem>>, vector<4x32xf32>
    tpu.vector_store %arg13[%c0_10, %c1_11], %25 {strides = array<i32>} : memref<24x34xf32, #tpu.memory_space<vmem>>, vector<4x32xf32>,
    %c15_i32 = arith.constant 15 : i32
    %27 = vector.broadcast %c15_i32 : i32 to vector<4x32xi32>
    %28 = arith.cmpi eq, %19, %27 : vector<4x32xi32>
    %c4_12 = arith.constant 4 : index
    %c2 = arith.constant 2 : index
    %29 = vector.load %arg13[%c4_12, %c2] : memref<24x34xf32, #tpu.memory_space<vmem>>, vector<4x32xf32>
    %cst_13 = arith.constant 0.000000e+00 : f32
    %30 = vector.broadcast %cst_13 : f32 to vector<4x32xf32>
    %31 = arith.select %28, %30, %29 : vector<4x32xi1>, vector<4x32xf32>
    %c8 = arith.constant 8 : index
    %c1_14 = arith.constant 1 : index
    %32 = vector.load %arg13[%c8, %c1_14] : memref<24x34xf32, #tpu.memory_space<vmem>>, vector<4x32xf32>
    tpu.vector_store %arg13[%c8, %c1_14], %31 {strides = array<i32>} : memref<24x34xf32, #tpu.memory_space<vmem>>, vector<4x32xf32>,
    %c0_15 = arith.constant 0 : index
    %c0_16 = arith.constant 0 : index
    %33 = vector.load %arg1[%c0_15, %c0_16] : memref<8x12xf32, #tpu.memory_space<vmem>>, vector<8x12xf32>
    %c0_17 = arith.constant 0 : index
    %c1_18 = arith.constant 1 : index
    %34 = vector.load %arg13[%c0_17, %c1_18] : memref<24x34xf32, #tpu.memory_space<vmem>>, vector<12x32xf32>
    %cst_19 = arith.constant dense<0.000000e+00> : vector<8x32xf32>
    %35 = tpu.matmul %33, %34, %cst_19 {dimension_numbers = #tpu.dot_dimension_numbers<[1], [0], [0], [1], [0, 0, 1, 1], [], []>} : vector<8x12xf32>, vector<12x32xf32>, vector<8x32xf32> -> vector<8x32xf32>
    %c0_20 = arith.constant 0 : index
    %c0_21 = arith.constant 0 : index
    %36 = vector.load %arg2[%c0_20, %c0_21] : memref<8x1xf32, #tpu.memory_space<vmem>>, vector<8x1xf32>
    %37 = vector.broadcast %36 : vector<8x1xf32> to vector<8x32xf32>
    %38 = arith.addf %35, %37 : vector<8x32xf32>
    %cst_22 = arith.constant 0.000000e+00 : f32
    %39 = vector.broadcast %cst_22 : f32 to vector<8x32xf32>
    %40 = arith.maximumf %38, %39 : vector<8x32xf32>
    %41 = tpu.iota {dimensions = array<i32: 1>} : vector<8x32xi32>
    %c16_i32_23 = arith.constant 16 : i32
    %c0_i32_24 = arith.constant 0 : i32
    %42 = arith.cmpi eq, %c16_i32_23, %c0_i32_24 : i32
    %c1_i32_25 = arith.constant 1 : i32
    %43 = arith.select %42, %c1_i32_25, %c16_i32_23 : i32
    %44 = vector.broadcast %43 : i32 to vector<8x32xi32>
    %45 = arith.remsi %41, %44 : vector<8x32xi32>
    %c0_i32_26 = arith.constant 0 : i32
    %46 = vector.broadcast %c0_i32_26 : i32 to vector<8x32xi32>
    %47 = arith.cmpi ne, %45, %46 : vector<8x32xi32>
    %c0_i32_27 = arith.constant 0 : i32
    %48 = vector.broadcast %c0_i32_27 : i32 to vector<8x32xi32>
    %49 = arith.cmpi slt, %45, %48 : vector<8x32xi32>
    %c0_i32_28 = arith.constant 0 : i32
    %50 = arith.cmpi slt, %43, %c0_i32_28 : i32
    %51 = vector.broadcast %50 : i1 to vector<8x32xi1>
    %52 = vector.broadcast %51 : vector<8x32xi1> to vector<8x32xi1>
    %53 = arith.xori %49, %52 : vector<8x32xi1>
    %54 = arith.andi %53, %47 : vector<8x32xi1>
    %55 = vector.broadcast %43 : i32 to vector<8x32xi32>
    %56 = arith.addi %45, %55 : vector<8x32xi32>
    %57 = arith.select %54, %56, %45 : vector<8x32xi1>, vector<8x32xi32>
    %c8_29 = arith.constant 8 : index
    %c1_30 = arith.constant 1 : index
    %58 = vector.load %arg13[%c8_29, %c1_30] : memref<24x34xf32, #tpu.memory_space<vmem>>, vector<8x32xf32>
    tpu.vector_store %arg13[%c8_29, %c1_30], %40 {strides = array<i32>} : memref<24x34xf32, #tpu.memory_space<vmem>>, vector<8x32xf32>,
    %c0_i32_31 = arith.constant 0 : i32
    %59 = vector.broadcast %c0_i32_31 : i32 to vector<8x32xi32>
    %60 = arith.cmpi eq, %57, %59 : vector<8x32xi32>
    %c8_32 = arith.constant 8 : index
    %c0_33 = arith.constant 0 : index
    %61 = vector.load %arg13[%c8_32, %c0_33] : memref<24x34xf32, #tpu.memory_space<vmem>>, vector<8x32xf32>
    %cst_34 = arith.constant 0.000000e+00 : f32
    %62 = vector.broadcast %cst_34 : f32 to vector<8x32xf32>
    %63 = arith.select %60, %62, %61 : vector<8x32xi1>, vector<8x32xf32>
    %c0_35 = arith.constant 0 : index
    %c1_36 = arith.constant 1 : index
    %64 = vector.load %arg13[%c0_35, %c1_36] : memref<24x34xf32, #tpu.memory_space<vmem>>, vector<8x32xf32>
    tpu.vector_store %arg13[%c0_35, %c1_36], %63 {strides = array<i32>} : memref<24x34xf32, #tpu.memory_space<vmem>>, vector<8x32xf32>,
    %c15_i32_37 = arith.constant 15 : i32
    %65 = vector.broadcast %c15_i32_37 : i32 to vector<8x32xi32>
    %66 = arith.cmpi eq, %57, %65 : vector<8x32xi32>
    %c8_38 = arith.constant 8 : index
    %c2_39 = arith.constant 2 : index
    %67 = vector.load %arg13[%c8_38, %c2_39] : memref<24x34xf32, #tpu.memory_space<vmem>>, vector<8x32xf32>
    %cst_40 = arith.constant 0.000000e+00 : f32
    %68 = vector.broadcast %cst_40 : f32 to vector<8x32xf32>
    %69 = arith.select %66, %68, %67 : vector<8x32xi1>, vector<8x32xf32>
    %c16 = arith.constant 16 : index
    %c1_41 = arith.constant 1 : index
    %70 = vector.load %arg13[%c16, %c1_41] : memref<24x34xf32, #tpu.memory_space<vmem>>, vector<8x32xf32>
    tpu.vector_store %arg13[%c16, %c1_41], %69 {strides = array<i32>} : memref<24x34xf32, #tpu.memory_space<vmem>>, vector<8x32xf32>,
    %c0_42 = arith.constant 0 : index
    %c0_43 = arith.constant 0 : index
    %71 = vector.load %arg3[%c0_42, %c0_43] : memref<16x24xf32, #tpu.memory_space<vmem>>, vector<16x24xf32>
    %c0_44 = arith.constant 0 : index
    %c1_45 = arith.constant 1 : index
    %72 = vector.load %arg13[%c0_44, %c1_45] : memref<24x34xf32, #tpu.memory_space<vmem>>, vector<24x32xf32>
    %cst_46 = arith.constant dense<0.000000e+00> : vector<16x32xf32>
    %73 = tpu.matmul %71, %72, %cst_46 {dimension_numbers = #tpu.dot_dimension_numbers<[1], [0], [0], [1], [0, 0, 1, 1], [], []>} : vector<16x24xf32>, vector<24x32xf32>, vector<16x32xf32> -> vector<16x32xf32>
    %c0_47 = arith.constant 0 : index
    %c0_48 = arith.constant 0 : index
    %74 = vector.load %arg4[%c0_47, %c0_48] : memref<16x1xf32, #tpu.memory_space<vmem>>, vector<16x1xf32>
    %75 = vector.broadcast %74 : vector<16x1xf32> to vector<16x32xf32>
    %76 = arith.addf %73, %75 : vector<16x32xf32>
    %cst_49 = arith.constant 0.000000e+00 : f32
    %77 = vector.broadcast %cst_49 : f32 to vector<16x32xf32>
    %78 = arith.maximumf %76, %77 : vector<16x32xf32>
    %c0_50 = arith.constant 0 : index
    %c0_51 = arith.constant 0 : index
    %79 = vector.load %arg5[%c0_50, %c0_51] : memref<2x32xf32, #tpu.memory_space<vmem>>, vector<2x32xf32>
    "tpu.trace_start"() <{level = 10 : i32, message = "ns,cs->nc"}> : () -> ()
    %cst_52 = arith.constant dense<0.000000e+00> : vector<2x16xf32>
    %80 = tpu.matmul %79, %78, %cst_52 {dimension_numbers = #tpu.dot_dimension_numbers<[1], [1], [0], [0], [0, 0, 1, 0], [], []>} : vector<2x32xf32>, vector<16x32xf32>, vector<2x16xf32> -> vector<2x16xf32>
    "tpu.trace_stop"() : () -> ()
    %c0_53 = arith.constant 0 : index
    %c0_54 = arith.constant 0 : index
    %81 = vector.load %arg6[%c0_53, %c0_54] : memref<16x32xf32, #tpu.memory_space<vmem>>, vector<16x32xf32>
    %cst_55 = arith.constant dense<0.000000e+00> : vector<2x32xf32>
    %82 = tpu.matmul %80, %81, %cst_55 {dimension_numbers = #tpu.dot_dimension_numbers<[1], [0], [0], [1], [0, 0, 1, 1], [], []>} : vector<2x16xf32>, vector<16x32xf32>, vector<2x32xf32> -> vector<2x32xf32>
    %c0_56 = arith.constant 0 : index
    %c0_57 = arith.constant 0 : index
    %83 = vector.load %arg7[%c0_56, %c0_57] : memref<1x32xf32, #tpu.memory_space<vmem>>, vector<1x32xf32>
    %84 = vector.broadcast %83 : vector<1x32xf32> to vector<2x32xf32>
    %85 = arith.addf %82, %84 : vector<2x32xf32>
    %c0_58 = arith.constant 0 : index
    %c0_59 = arith.constant 0 : index
    %86 = vector.load %arg8[%c0_58, %c0_59] : memref<32x16xf32, #tpu.memory_space<vmem>>, vector<32x16xf32>
    %cst_60 = arith.constant dense<0.000000e+00> : vector<2x16xf32>
    %87 = tpu.matmul %85, %86, %cst_60 {dimension_numbers = #tpu.dot_dimension_numbers<[1], [0], [0], [1], [0, 0, 1, 1], [], []>} : vector<2x32xf32>, vector<32x16xf32>, vector<2x16xf32> -> vector<2x16xf32>
    %c0_61 = arith.constant 0 : index
    %c0_62 = arith.constant 0 : index
    %88 = vector.load %arg9[%c0_61, %c0_62] : memref<1x16xf32, #tpu.memory_space<vmem>>, vector<1x16xf32>
    %89 = vector.broadcast %88 : vector<1x16xf32> to vector<2x16xf32>
    %90 = arith.addf %87, %89 : vector<2x16xf32>
    %cst_63 = arith.constant 0.000000e+00 : f32
    %91 = vector.broadcast %cst_63 : f32 to vector<2x16xf32>
    %92 = arith.maximumf %90, %91 : vector<2x16xf32>
    %c0_64 = arith.constant 0 : index
    %c0_65 = arith.constant 0 : index
    %93 = vector.load %arg10[%c0_64, %c0_65] : memref<16x3xf32, #tpu.memory_space<vmem>>, vector<16x3xf32>
    %cst_66 = arith.constant dense<0.000000e+00> : vector<2x3xf32>
    %94 = tpu.matmul %92, %93, %cst_66 {dimension_numbers = #tpu.dot_dimension_numbers<[1], [0], [0], [1], [0, 0, 1, 1], [], []>} : vector<2x16xf32>, vector<16x3xf32>, vector<2x3xf32> -> vector<2x3xf32>
    %c0_67 = arith.constant 0 : index
    %c0_68 = arith.constant 0 : index
    %95 = vector.load %arg11[%c0_67, %c0_68] : memref<1x3xf32, #tpu.memory_space<vmem>>, vector<1x3xf32>
    %96 = vector.broadcast %95 : vector<1x3xf32> to vector<2x3xf32>
    %97 = arith.addf %94, %96 : vector<2x3xf32>
    %c0_69 = arith.constant 0 : index
    %c0_70 = arith.constant 0 : index
    %98 = vector.load %arg12[%c0_69, %c0_70] : memref<2x3xf32, #tpu.memory_space<vmem>>, vector<2x3xf32>
    tpu.vector_store %arg12[%c0_69, %c0_70], %97 {strides = array<i32>} : memref<2x3xf32, #tpu.memory_space<vmem>>, vector<2x3xf32>,
    return
  }
}

</mosaic_0001>

<bundles_post_ra>
// kernel: _net_forward_impl.1
= control target key start
LH: loop header
LB: loop body
LE: loop exit
PB: predicated region body
PF: predicated region fallthrough
CT: control target
= control target key end

     0   :  { %vm42_vm0 = vcmask 277504   ;;  %s817_s23 = smov 1   ;;  %v818_v1 = vmov 0.0   ;;  %s1020_s0 = inlined_call_operand.vmem [shape: f32[4,32], index: 0, kind: input, shape index: {}]   ;;  %s1021_s1 = inlined_call_operand.vmem [shape: f32[8,12], index: 1, kind: input, shape index: {}]   ;;  %s1022_s2 = inlined_call_operand.vmem [shape: f32[8,1], index: 2, kind: input, shape index: {}]   ;;  %s1023_s3 = inlined_call_operand.vmem [shape: f32[16,24], index: 3, kind: input, shape index: {}]   ;;  %s1024_s4 = inlined_call_operand.vmem [shape: f32[16,1], index: 4, kind: input, shape index: {}]   ;;  %s1025_s5 = inlined_call_operand.vmem [shape: f32[2,32], index: 5, kind: input, shape index: {}]   ;;  %s1026_s6 = inlined_call_operand.vmem [shape: f32[16,32], index: 6, kind: input, shape index: {}]   ;;  %s1027_s7 = inlined_call_operand.vmem [shape: f32[1,32], index: 7, kind: input, shape index: {}]   ;;  %s1028_s8 = inlined_call_operand.vmem [shape: f32[32,16], index: 8, kind: input, shape index: {}]   ;;  %s1029_s9 = inlined_call_operand.vmem [shape: f32[1,16], index: 9, kind: input, shape index: {}]   ;;  %s1030_s10 = inlined_call_operand.vmem [shape: f32[16,3], index: 10, kind: input, shape index: {}]   ;;  %s1031_s11 = inlined_call_operand.vmem [shape: f32[1,3], index: 11, kind: input, shape index: {}]   ;;  %s1032_s12 = inlined_call_operand.hbm [shape: f32[2,3], index: 12, kind: output, shape index: {}]  }
   0x1   :  { %v46_v0 = vld [vmem:[%s1020_s0] sm:$0xf]  ;;  %43 = vst.msk [vmem:[#allocation2] sm:$0xff] %vm42_vm0, %v818_v1  ;;  %44 = vst.msk [vmem:[#allocation2 + $0x8] sm:$0xff] %vm42_vm0, %v818_v1 }
   0x2   :  { %62 = vrot.lane.b32.xlu0 %v46_v0, %s817_s23  ;;  %45 = vst.msk [vmem:[#allocation2 + $0x10] sm:$0xff] %vm42_vm0, %v818_v1 }
   0x3   :  { %17 = vsyncpa [#allocation4], 0  ;;  %v47_v2 = vlaneseq  ;;  %vm65_vm1 = vcmask 265224   ;;  %s819_s0 = smov 126   ;;  %v820_v15 = vmov 0.0|0.0   ;;  %vm821_vm4 = vmmov 0  }
   0x4   :  { %748 = vmatprep.subr.bf16.mxu0 %v820_v15  ;;  %704 = vmatprep.mubr.msk.f32.mxu0 %vm821_vm4, %v818_v1  ;;  %v90_v16 = vld [vmem:[%s1022_s2] sm:$0xff]  ;;  %v822_v17 = vmov 0   ;;  %s823_s26 = smov 127   ;;  %vm107_vm5 = vcmask 1043456   ;;  %vm824_vm6 = vmmov 1   ;;  %vm103_vm8 = vcmask 97280  }
   0x5   :  { %v48_v3 = vand.u32 127, %v47_v2  ;;  %786 = vset.pattern.permute.xlu1 %v822_v17  ;;  %792 = vset.pattern.permute.xlu0 %v822_v17  ;;  %vm750_vm7 = vmpackc.low %vm107_vm5, %vm824_vm6  ;;  %v87_v25 = vld [vmem:[%s1021_s1] sm:$0xff]  ;;  %vm185_vm9 = vcmask 269320   ;;  %vm234_vm10 = vcmask 195584   ;;  %v211_v43 = vld [vmem:[%s1024_s4 + $0x8] sm:$0xff]  ;;  %vm319_vm11 = vcmask 261120  }
   0x6   :  { %v205_v39 = vld [vmem:[%s1023_s3] sm:$0xff]  ;;  %v206_v49 = vld [vmem:[%s1023_s3 + $0x8] sm:$0xff]  ;;  %vm758_vm12 = vmpackc.low %vm319_vm11, %vm319_vm11  ;;  %vm408_vm13 = vcmask 130048   ;;  %s825_s14 = smov [#allocation3]   ;;  %vm649_vm14 = vcmask 17408  }
   0x7   :  { %v53_v5 = vand.u32 15, %v48_v3  ;;  %713 = vmatprep.mubr.msk.f32.mxu1 %vm234_vm10, %v205_v39  ;;  %v210_v46 = vld [vmem:[%s1024_s4] sm:$0xff]  ;;  %v400_v51 = vld [vmem:[%s1026_s6 + $0x8] sm:$0xff]  ;;  %v485_v6 = vld [vmem:[%s1028_s8 + $0x18] sm:$0xff]  ;;  %s657_s15 = sshll.u32 %s825_s14, 4  ;;  %s658_s15 = int_to_ptr.vmem [resolvable:$true] %s657_s15 }
   0x8   :  { %v399_v50 = vld [vmem:[%s1026_s6] sm:$0xff]  ;;  %v483_v0 = vld [vmem:[%s1028_s8 + $0x8] sm:$0xff]  ;;  %p798_p1 = scmp.lt.s32.totalorder %s658_s15, %s658_s15 }
   0x9   :  { %vm899_vm2 = vcmp.eq.s32.totalorder %v53_v5, 0  ;;  %vm907_vm3 = vcmp.eq.s32.totalorder %v53_v5, 15  ;;  %v761_v52 = vpack.c.bf16 %v400_v51, %v399_v50  ;;  %v318_v62 = vld [vmem:[%s1025_s5] sm:$0x3]  ;;  %v484_v5 = vld [vmem:[%s1028_s8 + $0x10] sm:$0xff] }
   0xa   :  { %v482_v63 = vld [vmem:[%s1028_s8] sm:$0xff] }
   0xb   :  { %v764_v2 = vpack.c.bf16 %v483_v0, %v482_v63 }
  0x74   :  { %v63_v4 = vpop.permute.xlu0 %62 }
  0x75   :  { %66 = vst.msk [vmem:[#allocation2 + $0x4] sm:$0xf] %vm65_vm1, %v63_v4 }
  0x7c   :  { %v76_v7 = vld [vmem:[#allocation2 + $0x4] sm:$0xf] }
  0x7d   :  { %v68_v8 = vld [vmem:[#allocation2 + $0x4] sm:$0xf]  ;;  %78 = vrot.lane.b32.xlu0 %v76_v7, %s819_s0  ;;  %v767_v7 = vpack.c.bf16 %v485_v6, %v484_v5 }
  0x7e   :  { %v69_v9 = vsel %vm899_vm2, 0.0, %v68_v8  ;;  %v672_v8 = vld [vmem:[%s1027_s7] ss:$0 sm:$0xff] }
  0x7f   :  { %71 = vrot.lane.b32.xlu1 %v69_v9, %s817_s23 }
  0xef   :  { %v79_v11 = vpop.permute.xlu0 %78 }
  0xf0   :  { %v81_v12 = vsel %vm907_vm3, 0.0, %v79_v11 }
  0xf1   :  { %v72_v13 = vpop.permute.xlu1 %71  ;;  %83 = vrot.lane.b32.xlu1 %v81_v12, %s817_s23  ;;  %v568_v12 = vld [vmem:[%s1030_s10 + $0x8] sm:$0xff] }
  0xf2   :  { %74 = vst.msk [vmem:[#allocation2] sm:$0xf] %vm65_vm1, %v72_v13 }
  0xf5   :  { %93 = vperm.xlu1 %786, %v90_v16  }
  0xf9   :  { %v88_v18 = vld [vmem:[#allocation2] sm:$0xff] }
 0x163   :  { %v84_v14 = vpop.permute.xlu1 %83 }
 0x164   :  { %86 = vst.msk [vmem:[#allocation2 + $0x8] sm:$0xf] %vm65_vm1, %v84_v14  ;;  %v674_v14 = vld [vmem:[%s1029_s9] ss:$0 sm:$0xff] }
 0x16b   :  { %v89_v19 = vld [vmem:[#allocation2 + $0x8] sm:$0xf] }
 0x16c   :  { %v781_v20 = vpack.i.bf16 %v89_v19, %v88_v18  ;;  %v676_v19 = vld [vmem:[%s1031_s11] ss:$0 sm:$0xff] }
 0x16e   :  { %782 = vrot.lane.b32.xlu0 %v781_v20, %s823_s26 }
 0x174   :  { %v94_v26 = vpop.permute.xlu1 %93 }
 0x1e0   :  { %v783_v21 = vpop.permute.xlu0 %782 }
 0x1e1   :  { %v785_v22 = vunpack.i.h.bf16 %v783_v21  ;;  %v784_v23 = vunpack.i.l.bf16 %v783_v21 }
 0x1e3   :  { %v749_v24 = vpack.c.bf16 %v785_v22, %v784_v23 }
 0x1e5   :  { %751 = vmatpush3.bf16.msk.msra.mxu0 %vm750_vm7, %v749_v24 }
 0x1e6   :  { %756 = vmatprep.subr.bf16.mxu0 %v820_v15 }
 0x1e8   :  { %705 = vmatmul.mubr.msk.f32.vlgmr.msra.gmra.mrb[0].mxu0 %vm103_vm8, %v87_v25 }
 0x1e9   :  { %720 = vmatprep.mubr.msk.f32.mxu0 %vm821_vm4, %v818_v1 }
 0x2bb   :  { %v176_v27 = vpop.f32.mrb[0].mxu0 }
 0x2bc   :  { %v177_v28 = vadd.f32 %v176_v27, %v94_v26  ;;  %v706_v29 = vpop.f32.mrb[1].mxu0 }
 0x2be   :  { %v180_v30 = vmax.f32 %v177_v28, 0.0 }
 0x2c0   :  { %182 = vrot.lane.b32.xlu0 %v180_v30, %s817_s23 }
 0x332   :  { %v183_v31 = vpop.permute.xlu0 %182 }
 0x333   :  { %186 = vst.msk [vmem:[#allocation2 + $0x8] sm:$0xff] %vm185_vm9, %v183_v31 }
 0x33a   :  { %v194_v32 = vld [vmem:[#allocation2 + $0x8] sm:$0xff] }
 0x33b   :  { %196 = vrot.lane.b32.xlu1 %v194_v32, %s819_s0  ;;  %v188_v33 = vsel %vm899_vm2, 0.0, %v194_v32 }
 0x33c   :  { %190 = vrot.lane.b32.xlu0 %v188_v33, %s817_s23 }
 0x3ad   :  { %v197_v34 = vpop.permute.xlu1 %196 }
 0x3ae   :  { %v199_v35 = vsel %vm907_vm3, 0.0, %v197_v34  ;;  %v191_v36 = vpop.permute.xlu0 %190 }
 0x3af   :  { %193 = vst.msk [vmem:[#allocation2] sm:$0xff] %vm185_vm9, %v191_v36  ;;  %201 = vrot.lane.b32.xlu1 %v199_v35, %s817_s23 }
 0x3b6   :  { %v207_v37 = vld [vmem:[#allocation2] sm:$0xff] }
 0x3b7   :  { %v787_v38 = vpack.i.bf16 %v194_v32, %v207_v37 }
 0x3b9   :  { %788 = vrot.lane.b32.xlu0 %v787_v38, %s823_s26 }
 0x3bd   :  { %214 = vperm.xlu0 %792, %v210_v46  }
 0x421   :  { %v202_v40 = vpop.permute.xlu1 %201 }
 0x422   :  { %204 = vst.msk [vmem:[#allocation2 + $0x10] sm:$0xff] %vm185_vm9, %v202_v40 }
 0x429   :  { %v209_v41 = vld [vmem:[#allocation2 + $0x10] sm:$0xff] }
 0x42a   :  { %229 = vrot.lane.b32.xlu1 %v209_v41, %s823_s26 }
 0x42b   :  { %v789_v42 = vpop.permute.xlu0 %788 }
 0x42c   :  { %v791_v44 = vunpack.i.h.bf16 %v789_v42  ;;  %v790_v45 = vunpack.i.l.bf16 %v789_v42 }
 0x42e   :  { %219 = vperm.xlu1 %786, %v211_v43   ;;  %v752_v47 = vpack.c.bf16 %v791_v44, %v790_v45 }
 0x430   :  { %753 = vmatprep.subr.bf16.mxu1 %v752_v47 }
 0x431   :  { %755 = vmatpush3.bf16.msra.mxu1 %v752_v47 }
 0x43c   :  { %v215_v53 = vpop.permute.xlu0 %214 }
 0x49c   :  { %v230_v48 = vpop.permute.xlu1 %229 }
 0x49d   :  { %711 = vmatprep.subr.mxu1 %v230_v48 }
 0x49e   :  { %712 = vmatpush3.msra.mxu1 %v230_v48 }
 0x49f   :  { %714 = vmatmul.mubr.msk.f32.vlgmr.msra.gmra.mrb[0].mxu1 %vm234_vm10, %v206_v49  ;;  %760 = vmatprep.subr.bf16.mxu1 %v820_v15 }
 0x4a0   :  { %727 = vmatprep.mubr.msk.f32.mxu1 %vm821_vm4, %v818_v1  ;;  %762 = vmatpush3.bf16.msra.mxu1 %v761_v52 }
 0x4a1   :  { %763 = vmatprep.subr.bf16.mxu1 %v820_v15 }
 0x4ad   :  { %v220_v54 = vpop.permute.xlu1 %219 }
 0x572   :  { %v715_v55 = vpop.f32.mrb[0].mxu1 }
 0x573   :  { %v313_v56 = vadd.f32 %v715_v55, %v220_v54  ;;  %v307_v57 = vpop.f32.mrb[1].mxu1 }
 0x574   :  { %v308_v58 = vadd.f32 %v307_v57, %v215_v53 }
 0x575   :  { %v317_v59 = vmax.f32 %v313_v56, 0.0 }
 0x576   :  { %v316_v60 = vmax.f32 %v308_v58, 0.0 }
 0x578   :  { %v757_v61 = vpack.c.bf16 %v317_v59, %v316_v60 }
 0x57a   :  { %759 = vmatpush3.bf16.xpose.msk.msra.mxu0 %vm758_vm12, %v757_v61 }
 0x57b   :  { %769 = vmatprep.subr.bf16.mxu0 %v820_v15 }
 0x581   :  { %721 = vmatmul.mubr.msk.f32.vlgmr.msra.gmra.mrb[2].mxu0 %vm319_vm11, %v318_v62 }
 0x582   :  { %745 = vmatprep.mubr.msk.f32.mxu0 %vm821_vm4, %v818_v1 }
 0x654   :  { %v395_v3 = vpop.f32.mrb[2].mxu0 }
 0x655   :  { %v722_v4 = vpop.f32.mrb[3].mxu0  ;;  %728 = vmatmul.mubr.msk.f32.vlgmr.msra.gmra.mrb[2].mxu1 %vm408_vm13, %v395_v3 }
 0x656   :  { %765 = vmatpush3.bf16.msra.mxu1 %v764_v2  ;;  %738 = vmatprep.mubr.msk.f32.mxu1 %vm821_vm4, %v818_v1  ;;  %v567_v1 = vld [vmem:[%s1030_s10] sm:$0xff]  ;;  %s793_s10 = scalar_lea.vmem %s658_s15, 32 }
 0x657   :  { %766 = vmatprep.subr.bf16.mxu1 %v820_v15  ;;  %v770_v13 = vpack.c.bf16 %v568_v12, %v567_v1  ;;  %p794_p0 = scmp.ne.s32.totalorder %s658_s15, %s793_s10  ;;  %p799_p2 = scmp.lt.s32.totalorder %s793_s10, %s793_s10 }
 0x659   :  { %771 = vmatpush3.bf16.msra.mxu0 %v770_v13  ;;  %p800_p3 = por %p799_p2, %p798_p1 }
 0x65a   :  { %768 = vmatpush3.bf16.msra.mxu1 %v767_v7 }
 0x65b   :  { %p801_p4 = pnand %p800_p3, %p794_p0 }
 0x728   :  { %v478_v9 = vpop.f32.mrb[2].mxu1 }
 0x729   :  { %v479_v10 = vadd.f32 %v672_v8, %v478_v9  ;;  %v729_v11 = vpop.f32.mrb[3].mxu1 }
 0x72b   :  { %739 = vmatmul.mubr.msk.f32.vlgmr.msra.gmra.mrb[4].mxu1 %vm319_vm11, %v479_v10 }
 0x7fe   :  { %v562_v15 = vpop.f32.mrb[4].mxu1 }
 0x7ff   :  { %v563_v16 = vadd.f32 %v674_v14, %v562_v15  ;;  %v740_v17 = vpop.f32.mrb[5].mxu1 }
 0x801   :  { %v566_v18 = vmax.f32 %v563_v16, 0.0 }
 0x803   :  { %746 = vmatmul.mubr.msk.f32.vlgmr.msra.gmra.mrb[4].mxu0 %vm408_vm13, %v566_v18 }
 0x8d6   :  { %v645_v20 = vpop.f32.mrb[4].mxu0 }
 0x8d7   :  { %v646_v21 = vadd.f32 %v676_v19, %v645_v20  ;;  %v747_v22 = vpop.f32.mrb[5].mxu0 }
 0x8d9   :  { %650 = vst.msk [vmem:[#allocation3] sm:$0x3] %vm649_vm14, %v646_v21 }
 0x8da   :  { %804 = shalt.err (!%p801_p4)
}
 0x8db   :  { %s805_s4 = scalar_lea.hbm %s1032_s12, 32 }
 0x8dc   :  { %p806_p5 = scmp.ne.s32.totalorder %s1032_s12, %s805_s4  ;;  %p809_p6 = scmp.lt.u32.totalorder %s805_s4, %s1032_s12 }
 0x8de   :  { %p811_p7 = pnand %p809_p6, %p806_p5 }
 0x8e0   :  { %814 = shalt.err (!%p811_p7)
}
 0x8e1   :  { %660 = dma.vmem_to_hbm [thread:$0]  %s658_s15, 32, %s1032_s12, [#allocation4]  }
 0x8e2   :  { %815 = dma.done.wait [#allocation4], 32  }
 0x8e3   :  { %816 = vsyncadd [#allocation4], 4294967264 }
 0x8e4   :  { %664 = vsyncpa [#allocation4], 1 }

</bundles_post_ra>
